<compile_context>
chip_gen: v5e
topology: v5e:2x2
jax: 0.10.0
libtpu: 0.0.40
codegen_flags: <defaults>
</compile_context>

<pallas_src>
import jax
import jax.numpy as jnp
from jax import lax
from jax.experimental import pallas as pl
from jax.experimental.pallas import tpu as pltpu

_LANE = 128
_SUBLANE = 8


def _sublane_pack(dtype) -> int:
    """Sublane packing multiple for a dtype: 8 (f32), 16 (bf16/f16), 32 (int8/fp8)."""
    return _SUBLANE * max(1, 4 // jnp.dtype(dtype).itemsize)


def _make_mse_partial_kernel(tile_rows: int, valid_rows: int, chunk_rows: int,
                             needs_row_mask: bool):
    """Per grid step: out_ref[0] = (1, 128) f32 partial sum of (y - t)^2 over its tile."""
    n_full_chunks = tile_rows // chunk_rows
    rem_rows = tile_rows - n_full_chunks * chunk_rows  # multiple of the sublane pack

    def kernel(y_ref, t_ref, o_ref):
        i = pl.program_id(0)

        def chunk_partial(start_rows, rows_in_chunk, masked):
            if not isinstance(start_rows, int):
                start_rows = pl.multiple_of(start_rows, chunk_rows)
            y = y_ref[pl.ds(start_rows, rows_in_chunk), :].astype(jnp.float32)
            t = t_ref[pl.ds(start_rows, rows_in_chunk), :].astype(jnp.float32)
            d = y - t
            sq = d * d
            if masked:
                # Neutralize the last block's overshoot rows.  Keep this as a
                # select (jnp.where) so NaN/Inf from unspecified reads cannot
                # propagate (do not turn it into a multiply-by-mask).
                row_id = (i * tile_rows + start_rows
                          + lax.broadcasted_iota(jnp.int32, sq.shape, 0))
                sq = jnp.where(row_id < valid_rows, sq, 0.0)
            # Fold the chunk's rows into one (8, 128) vreg with pure VPU adds.
            return jnp.sum(
                sq.reshape(rows_in_chunk // _SUBLANE, _SUBLANE, _LANE), axis=0)

        def tile_sum(masked):
            acc = jnp.zeros((_SUBLANE, _LANE), jnp.float32)

            def body(c, a):
                return a + chunk_partial(c * chunk_rows, chunk_rows, masked)

            acc = lax.fori_loop(0, n_full_chunks, body, acc)
            if rem_rows > 0:
                acc = acc + chunk_partial(n_full_chunks * chunk_rows, rem_rows, masked)
            # One cross-sublane (XLU) fold -> lane-dense (1, 128) partial.
            o_ref[0] = jnp.sum(acc, axis=0, keepdims=True)

        if needs_row_mask:
            last = pl.num_programs(0) - 1

            @pl.when(i < last)
            def _():
                tile_sum(False)

            @pl.when(i == last)
            def _():
                tile_sum(True)
        else:
            tile_sum(False)

    return kernel


def mse_loss(yhat: jax.Array, target: jax.Array, *,
             tile_bytes_per_input: int = 4 * 1024 * 1024) -> jax.Array:
    """Pallas equivalent of F.mse_loss(yhat, target, reduction='mean')."""
    assert yhat.shape == target.shape, "mse_loss expects matching shapes"
    out_dtype = jnp.promote_types(yhat.dtype, target.dtype)
    n = int(yhat.size)
    if n == 0:
        # torch.nn.functional.mse_loss returns nan for empty tensors.
        return jnp.array(jnp.nan, dtype=out_dtype)

    pack = max(_sublane_pack(yhat.dtype), _sublane_pack(target.dtype))
    itemsize = max(jnp.dtype(yhat.dtype).itemsize, jnp.dtype(target.dtype).itemsize)

    yf = yhat.reshape(-1)
    tf = target.reshape(-1)

    rows_full = n // _LANE
    tail = n - rows_full * _LANE
    tail_sum = jnp.float32(0.0)

    if rows_full < pack:
        # Tiny input: pad up to one minimal (pack, 128) tile (a few KiB, and
        # zeros contribute nothing to sum((y - t)^2)).
        padded = pack * _LANE

        def _pad2d(x):
            return jnp.concatenate(
                [x, jnp.zeros((padded - n,), x.dtype)]).reshape(pack, _LANE)

        y2, t2 = _pad2d(yf), _pad2d(tf)
        rows = pack
    else:
        # 128-aligned prefix streams through the kernel (zero-copy reshape when
        # n % 128 == 0, the common case); the <128-element tail is summed in
        # plain JAX instead of zero-padding / copying the whole array.
        prefix = rows_full * _LANE
        y2 = yf[:prefix].reshape(rows_full, _LANE)
        t2 = tf[:prefix].reshape(rows_full, _LANE)
        rows = rows_full
        if tail:
            dt = yf[prefix:].astype(jnp.float32) - tf[prefix:].astype(jnp.float32)
            tail_sum = jnp.sum(dt * dt)

    # ---- tile sizing (per-generation safe) ---------------------------------
    # ~4 MiB per operand per pipeline buffer: 2 inputs x 2 buffers = 16 MiB of
    # input VMEM plus <1 MiB of chunked intermediates -> fits v7x's 64 MiB
    # physical VMEM; vmem_limit_bytes=48 MiB covers v5e's 16 MiB scoped default.
    budget_rows = max(pack, (tile_bytes_per_input // (_LANE * itemsize)) // pack * pack)
    tile_rows = min(budget_rows, max(pack, (rows // pack) * pack))
    # v7x megacore: prefer >= 4 grid steps when the data is big enough so the
    # "parallel" axis shards evenly across both TensorCores.
    if rows > tile_rows and rows // tile_rows < 4:
        tile_rows = max(pack, ((-(-rows // 4)) // pack) * pack)

    chunk_rows = min(tile_rows, 512)           # streamed in-tile reduction chunk
    num_blocks = -(-rows // tile_rows)
    needs_row_mask = (rows % tile_rows) != 0

    bytes_accessed = (
        rows * _LANE * (jnp.dtype(y2.dtype).itemsize + jnp.dtype(t2.dtype).itemsize)
        + num_blocks * _LANE * 4)
    cost = pl.CostEstimate(flops=3 * rows * _LANE, transcendentals=0,
                           bytes_accessed=bytes_accessed)

    partials = pl.pallas_call(
        _make_mse_partial_kernel(tile_rows, rows, chunk_rows, needs_row_mask),
        out_shape=jax.ShapeDtypeStruct((num_blocks, 1, _LANE), jnp.float32),
        grid=(num_blocks,),
        in_specs=[
            pl.BlockSpec((tile_rows, _LANE), lambda i: (i, 0)),
            pl.BlockSpec((tile_rows, _LANE), lambda i: (i, 0)),
        ],
        out_specs=pl.BlockSpec((1, 1, _LANE), lambda i: (i, 0, 0)),
        compiler_params=pltpu.CompilerParams(
            dimension_semantics=("parallel",),
            vmem_limit_bytes=48 * 1024 * 1024,
        ),
        cost_estimate=cost,
    )(y2, t2)

    # Tiny final reduce + mean in plain JAX (a few KB at most).
    total = jnp.sum(partials) + tail_sum
    return (total / jnp.float32(n)).astype(out_dtype)


if __name__ == "__main__":
    key = jax.random.PRNGKey(0)
    k1, k2 = jax.random.split(key)

    # Small NCHW tensors consistent with a segmentation/regression head.
    yhat = jax.random.normal(k1, (2, 4, 16, 16), dtype=jnp.float32)
    target = jax.random.normal(k2, (2, 4, 16, 16), dtype=jnp.float32)

    loss = mse_loss(yhat, target)
    loss = jax.block_until_ready(loss)

    # Reference check against plain JAX.
    ref = jnp.mean((yhat - target) ** 2)
    assert jnp.allclose(loss, ref, rtol=1e-5, atol=1e-6), (loss, ref)

    print("KERNEL_OK")
</pallas_src>

<mosaic_0001>
module attributes {stable_mosaic.version = 11 : i64} {
  func.func @kernel(%arg0: i32, %arg1: memref<16x128xf32, #tpu.memory_space<vmem>>, %arg2: memref<16x128xf32, #tpu.memory_space<vmem>>, %arg3: memref<1x1x128xf32, #tpu.memory_space<vmem>>) attributes {dimension_semantics = [#tpu.dimension_semantics<parallel>], iteration_bounds = array<i64: 1>, scalar_prefetch = 0 : i64, scratch_operands = 0 : i64, tpu.core_type = #tpu.core_type<tc>, window_params = [{transform_indices = @transform_0, window_bounds = array<i64: 16, 128>}, {transform_indices = @transform_1, window_bounds = array<i64: 16, 128>}, {transform_indices = @transform_2, window_bounds = array<i64: 1, 1, 128>}]} {
    %cst = arith.constant 0.000000e+00 : f32
    %0 = vector.broadcast %cst : f32 to vector<8x128xf32>
    %c0_i32 = arith.constant 0 : i32
    %c16_i32 = arith.constant 16 : i32
    %1 = arith.muli %c0_i32, %c16_i32 : i32
    %2 = tpu.assume_multiple %1, 16 : i32
    %3 = arith.index_cast %2 : i32 to index
    %c0 = arith.constant 0 : index
    %4 = vector.load %arg1[%3, %c0] : memref<16x128xf32, #tpu.memory_space<vmem>>, vector<16x128xf32>
    %5 = arith.index_cast %2 : i32 to index
    %c0_0 = arith.constant 0 : index
    %6 = vector.load %arg2[%5, %c0_0] : memref<16x128xf32, #tpu.memory_space<vmem>>, vector<16x128xf32>
    %7 = arith.subf %4, %6 : vector<16x128xf32>
    %8 = arith.mulf %7, %7 : vector<16x128xf32>
    %9 = vector.shape_cast %8 : vector<16x128xf32> to vector<2x8x128xf32>
    %cst_1 = arith.constant dense<0.000000e+00> : vector<8x128xf32>
    %10 = vector.multi_reduction <add>, %9, %cst_1 [0] : vector<2x8x128xf32> to vector<8x128xf32>
    %11 = arith.addf %0, %10 : vector<8x128xf32>
    %c1_i32 = arith.constant 1 : i32
    %cst_2 = arith.constant dense<0.000000e+00> : vector<128xf32>
    %12 = vector.multi_reduction <add>, %11, %cst_2 [0] : vector<8x128xf32> to vector<128xf32>
    %13 = vector.shape_cast %12 : vector<128xf32> to vector<1x128xf32>
    %c0_3 = arith.constant 0 : index
    %c0_4 = arith.constant 0 : index
    %c0_5 = arith.constant 0 : index
    %14 = vector.load %arg3[%c0_3, %c0_4, %c0_5] : memref<1x1x128xf32, #tpu.memory_space<vmem>>, vector<1x1x128xf32>
    %15 = vector.shape_cast %14 : vector<1x1x128xf32> to vector<1x128xf32>
    %16 = vector.shape_cast %13 : vector<1x128xf32> to vector<1x1x128xf32>
    tpu.vector_store %arg3[%c0_3, %c0_4, %c0_5], %16 {strides = array<i32>} : memref<1x1x128xf32, #tpu.memory_space<vmem>>, vector<1x1x128xf32>,
    return
  }
  func.func @transform_0(%arg0: i32) -> (i32, i32) {
    %c0_i32 = arith.constant 0 : i32
    %c0_i32_0 = arith.constant 0 : i32
    return %arg0, %c0_i32 : i32, i32
  }
  func.func @transform_1(%arg0: i32) -> (i32, i32) {
    %c0_i32 = arith.constant 0 : i32
    %c0_i32_0 = arith.constant 0 : i32
    return %arg0, %c0_i32 : i32, i32
  }
  func.func @transform_2(%arg0: i32) -> (i32, i32, i32) {
    %c0_i32 = arith.constant 0 : i32
    %c0_i32_0 = arith.constant 0 : i32
    %c0_i32_1 = arith.constant 0 : i32
    return %arg0, %c0_i32, %c0_i32_0 : i32, i32, i32
  }
}

</mosaic_0001>

<bundles_post_ra>
// kernel: tpu_custom_call.1
= control target key start
LH: loop header
LB: loop body
LE: loop exit
PB: predicated region body
PF: predicated region fallthrough
CT: control target
= control target key end

     0   :  { %7 = vsyncpa [#allocation3], 0  ;;  %s191_s0 = inlined_call_operand.hbm [shape: f32[16,128], index: 0, kind: input, shape index: {}]   ;;  %s192_s1 = inlined_call_operand.hbm [shape: f32[16,128], index: 1, kind: input, shape index: {}]   ;;  %s193_s2 = inlined_call_operand.hbm [shape: f32[1,1,128], index: 2, kind: output, shape index: {}]  }
   0x1   :  { %8 = vsyncpa [#allocation6], 0 }
   0x2   :  { %9 = vsyncpa [#allocation4], 0  ;;  %s14_s11 = sshll.u32 %s191_s0, 4  ;;  %s162_s12 = smov [#allocation2]   ;;  %s15_s11 = int_to_ptr.hbm [resolvable:$true] %s14_s11 }
   0x3   :  { %s16_s13 = sshll.u32 %s162_s12, 4  ;;  %s27_s16 = sshll.u32 %s192_s1, 4  ;;  %s17_s13 = int_to_ptr.vmem [resolvable:$true] %s16_s13  ;;  %s28_s16 = int_to_ptr.hbm [resolvable:$true] %s27_s16 }
   0x4   :  { %s163_s17 = smov 128   ;;  %s164_s18 = smov 8  }
   0x5   :  { %22 = dma.hbm_to_vmem [thread:$0]  %s15_s11, 256, %s17_s13, [#allocation3], %s163_s17, %s163_s17, %s164_s18  }
   0x6   :  { %s165_s19 = smov [#allocation5]  }
   0x7   :  { %s29_s20 = sshll.u32 %s165_s19, 4  ;;  %s30_s20 = int_to_ptr.vmem [resolvable:$true] %s29_s20 }
   0x8   :  { %35 = dma.hbm_to_vmem [thread:$0]  %s28_s16, 256, %s30_s20, [#allocation6], %s163_s17, %s163_s17, %s164_s18  }
   0x9   :  { %156 = dma.done.wait [#allocation3], 256  }
   0xa   :  { %157 = vsyncadd [#allocation3], 4294967040 }
   0xb   :  { %158 = dma.done.wait [#allocation6], 256  }
   0xc   :  { %159 = vsyncadd [#allocation6], 4294967040  ;;  %v44_v0 = vld [vmem:[#allocation2] sm:$0xff]  ;;  %v45_v1 = vld [vmem:[#allocation2 + $0x8] sm:$0xff]  ;;  %s166_s0 = smov [#allocation7]   ;;  %s68_s23 = sshll.u32 %s193_s2, 4  ;;  %s69_s23 = int_to_ptr.hbm [resolvable:$true] %s68_s23 }
   0xd   :  { %v46_v2 = vld [vmem:[#allocation5] sm:$0xff]  ;;  %v47_v3 = vld [vmem:[#allocation5 + $0x8] sm:$0xff]  ;;  %s66_s1 = sshll.u32 %s166_s0, 4  ;;  %s67_s1 = int_to_ptr.vmem [resolvable:$true] %s66_s1 }
   0xe   :  { %v48_v4 = vsub.f32 %v44_v0, %v46_v2  ;;  %v49_v5 = vsub.f32 %v45_v1, %v47_v3 }
  0x10   :  { %v50_v6 = vmul.f32 %v48_v4, %v48_v4  ;;  %v51_v7 = vmul.f32 %v49_v5, %v49_v5 }
  0x12   :  { %v52_v8 = vadd.f32 %v51_v7, %v50_v6 }
  0x14   :  { %v54_v9 = vrot.slane %v52_v8, 4 }
  0x16   :  { %v55_v10 = vadd.f32 %v54_v9, %v52_v8 }
  0x18   :  { %v56_v11 = vrot.slane %v55_v10, 2 }
  0x1a   :  { %v57_v12 = vadd.f32 %v56_v11, %v55_v10 }
  0x1c   :  { %v58_v13 = vrot.slane %v57_v12, 1 }
  0x1e   :  { %v59_v14 = vadd.f32 %v58_v13, %v57_v12 }
  0x20   :  { %60 = vst [vmem:[#allocation7] sm:$0x1] %v59_v14 }
  0x21   :  { %71 = dma.vmem_to_hbm [thread:$0]  %s67_s1, 16, %s69_s23, [#allocation4]  }
  0x22   :  { %160 = dma.done.wait [#allocation4], 16  }
  0x23   :  { %161 = vsyncadd [#allocation4], 4294967280 }
  0x24   :  { %76 = vsyncpa [#allocation3], 1 }
  0x25   :  { %77 = vsyncpa [#allocation6], 1 }
  0x26   :  { %78 = vsyncpa [#allocation4], 1 }

</bundles_post_ra>
